<compile_context>
chip_gen: v7x
topology: tpu7x:2x2x1
jax: 0.10.0
libtpu: 0.0.40
codegen_flags: <defaults>
</compile_context>

<pallas_src>
import functools

import jax
import jax.numpy as jnp
import numpy as np
from jax.experimental import pallas as pl
from jax.experimental.pallas import tpu as pltpu

BN_EPS = 1e-5
LANE = 128
SUBLANE = 8


def _round_up(x, m):
    return ((x + m - 1) // m) * m


# ---------------------------------------------------------------------------
# Pass 1: batch statistics -> fused BN scale/shift.
# Grid over N tiles ("arbitrary"): accumulate per-feature sum / sum-of-squares
# of e = x @ w in VMEM scratch; finalize scale/shift on the last tile.
# fc bias omitted: it cancels exactly under training-mode BatchNorm.
# ---------------------------------------------------------------------------
def _stats_kernel(x_ref, w_ref, gamma_ref, beta_ref, scale_ref, shift_ref,
                  sum_sc, ssq_sc, *, inv_n):
    i = pl.program_id(0)

    @pl.when(i == 0)
    def _():
        sum_sc[...] = jnp.zeros_like(sum_sc)
        ssq_sc[...] = jnp.zeros_like(ssq_sc)

    # bf16 cast inside the kernel (VPU slot, free when mem-bound); f32 accumulation.
    x = x_ref[...].astype(jnp.bfloat16)
    e = jnp.dot(x, w_ref[...], preferred_element_type=jnp.float32)   # (TILE_N, Hp)
    sum_sc[...] += jnp.sum(e, axis=0, keepdims=True)
    ssq_sc[...] += jnp.sum(e * e, axis=0, keepdims=True)

    @pl.when(i == pl.num_programs(0) - 1)
    def _():
        mean = sum_sc[...] * inv_n
        var = jnp.maximum(ssq_sc[...] * inv_n - mean * mean, 0.0)
        scale = gamma_ref[...] * jax.lax.rsqrt(var + BN_EPS)
        scale_ref[...] = scale
        shift_ref[...] = beta_ref[...] - mean * scale


# ---------------------------------------------------------------------------
# Pass 2: apply. Grid over N tiles ("parallel" -> megacore on v7x).
# Recompute e = x @ w (cheap at small F) and apply the fused BN affine + ReLU.
# ---------------------------------------------------------------------------
def _apply_kernel(x_ref, w_ref, scale_ref, shift_ref, o_ref):
    x = x_ref[...].astype(jnp.bfloat16)
    e = jnp.dot(x, w_ref[...], preferred_element_type=jnp.float32)   # (TILE_N, Hp)
    o_ref[...] = jnp.maximum(e * scale_ref[...] + shift_ref[...], 0.0
                             ).astype(o_ref.dtype)


# ---------------------------------------------------------------------------
# Wrapper-side helpers.
# ---------------------------------------------------------------------------
def prepool_prepare_params(w_t, gamma, beta):
    """One-time parameter prep (call at init, NOT per forward step):
    cast fc weight to bf16 and zero-pad F / H up to lane multiples (128)."""
    F, H = w_t.shape
    Fp, Hp = _round_up(F, LANE), _round_up(H, LANE)
    w_bf = jnp.pad(w_t.astype(jnp.bfloat16), ((0, Fp - F), (0, Hp - H)))
    gamma_f = jnp.pad(gamma.reshape(1, H).astype(jnp.float32), ((0, 0), (0, Hp - H)))
    beta_f = jnp.pad(beta.reshape(1, H).astype(jnp.float32), ((0, 0), (0, Hp - H)))
    return w_bf, gamma_f, beta_f


def _choose_tile_n(n_pad, Fp, Hp):
    # Double-buffered bytes per N row: x tile (f32) + out tile (bf16) + f32 e intermediate.
    per_row = 2 * Fp * 4 + 2 * Hp * 2 + Hp * 4
    fixed = 2 * Fp * Hp * 2 + 8 * Hp * 4          # w (bf16, dbuf) + scale/shift/scratch
    budget = 24 * 1024 * 1024                     # sized for v7x's 64 MiB VMEM per TC
    tile = max((budget - fixed) // per_row, SUBLANE)
    tile = min(tile, 1024, n_pad)
    return max((tile // SUBLANE) * SUBLANE, SUBLANE)


def prepool_forward(h, w_bf, gamma_f, beta_f, n_features, hidden_dim,
                    return_padded=False):
    """h: any shape whose trailing dims flatten to (-1, n_features).
    w_bf/gamma_f/beta_f: outputs of prepool_prepare_params (pre-cast, pre-padded).
    Returns relu(BN_train(Linear(h_flat))) of shape (N, hidden_dim) in bf16
    (or the zero-padded (n_pad, Hp) slab if return_padded=True, for fused consumers)."""
    Fp, Hp = w_bf.shape
    x = h.reshape(-1, n_features).astype(jnp.float32)
    N = x.shape[0]

    n_pad = _round_up(N, SUBLANE)
    tile_n = _choose_tile_n(n_pad, Fp, Hp)
    n_pad = _round_up(n_pad, tile_n)
    num_tiles = n_pad // tile_n

    # Zero-pad x to (n_pad, Fp): zero rows/cols contribute nothing to the batch stats
    # (bias is dropped, so e of a zero row is exactly zero).
    # TODO(synk): have the producer of h emit a lane-dense (n_pad, Fp) layout directly
    # so this per-call pad disappears.
    if (n_pad, Fp) != x.shape:
        x = jnp.pad(x, ((0, n_pad - N), (0, Fp - n_features)))

    inv_n = 1.0 / N

    vmem_est = (2 * tile_n * Fp * 4 + 2 * Fp * Hp * 2 + 2 * tile_n * Hp * 2
                + tile_n * Hp * 4 + 16 * Hp * 4)
    vmem_limit = int(min(max(2 * vmem_est, 8 << 20), 48 << 20))

    x_spec = pl.BlockSpec((tile_n, Fp), lambda i: (i, 0))
    w_spec = pl.BlockSpec((Fp, Hp), lambda i: (0, 0))
    vec_spec = pl.BlockSpec((1, Hp), lambda i: (0, 0))

    # ---- pass 1: batch stats -> fused scale/shift ---------------------------------
    scale, shift = pl.pallas_call(
        functools.partial(_stats_kernel, inv_n=inv_n),
        grid=(num_tiles,),
        in_specs=[x_spec, w_spec, vec_spec, vec_spec],
        out_specs=[vec_spec, vec_spec],
        out_shape=(jax.ShapeDtypeStruct((1, Hp), jnp.float32),
                   jax.ShapeDtypeStruct((1, Hp), jnp.float32)),
        scratch_shapes=[pltpu.VMEM((1, Hp), jnp.float32),
                        pltpu.VMEM((1, Hp), jnp.float32)],
        compiler_params=pltpu.CompilerParams(
            dimension_semantics=("arbitrary",),
            vmem_limit_bytes=vmem_limit),
        cost_estimate=pl.CostEstimate(
            flops=2 * n_pad * Fp * Hp + 4 * n_pad * Hp,
            transcendentals=Hp,
            bytes_accessed=n_pad * Fp * 4 + Fp * Hp * 2 + 4 * Hp * 4),
    )(x, w_bf, gamma_f, beta_f)

    # ---- pass 2: out = relu(e * scale + shift), e recomputed per tile -------------
    out = pl.pallas_call(
        _apply_kernel,
        grid=(num_tiles,),
        in_specs=[x_spec, w_spec, vec_spec, vec_spec],
        out_specs=pl.BlockSpec((tile_n, Hp), lambda i: (i, 0)),
        out_shape=jax.ShapeDtypeStruct((n_pad, Hp), jnp.bfloat16),
        compiler_params=pltpu.CompilerParams(
            dimension_semantics=("parallel",),
            vmem_limit_bytes=vmem_limit),
        cost_estimate=pl.CostEstimate(
            flops=2 * n_pad * Fp * Hp + 3 * n_pad * Hp,
            transcendentals=0,
            bytes_accessed=(n_pad * Fp * 4 + Fp * Hp * 2 + 2 * Hp * 4
                            + n_pad * Hp * 2)),
    )(x, w_bf, scale, shift)

    if return_padded:
        return out
    return out[:N, :hidden_dim]


def prepool_reference(h, w_t, b, gamma, beta, n_features):
    """Pure-JAX reference, fc bias INCLUDED (proves it cancels under training-mode BN).
    Matmul inputs cast to bf16 like the kernel so the comparison is apples-to-apples."""
    x = h.reshape(-1, n_features).astype(jnp.bfloat16).astype(jnp.float32)
    w = w_t.astype(jnp.bfloat16).astype(jnp.float32)
    e = x @ w + b
    mean = e.mean(axis=0, keepdims=True)
    var = ((e - mean) ** 2).mean(axis=0, keepdims=True)   # biased, matches PyTorch BN train
    norm = (e - mean) / jnp.sqrt(var + BN_EPS)
    return jnp.maximum(norm * gamma + beta, 0.0)


if __name__ == "__main__":
    # Module hyperparameters (small, self-consistent shapes).
    batch_size = 2
    n_hidden = 4            # leading "set" dimension; flattened into the batch
    n_features = 32
    hidden_dim = 64         # < 128: exercises the lane-dense padding path

    key = jax.random.PRNGKey(0)
    k_h, k_w, k_b, k_g, k_be = jax.random.split(key, 5)

    # Input h: (batch, n_hidden, n_features) -> flattened to (batch*n_hidden, n_features)
    h = jax.random.normal(k_h, (batch_size, n_hidden, n_features), dtype=jnp.float32)

    # Deterministic parameter init (PyTorch-Linear-style uniform bound).
    bound = 1.0 / np.sqrt(n_features)
    w_t = jax.random.uniform(k_w, (n_features, hidden_dim), jnp.float32, -bound, bound)
    b = jax.random.uniform(k_b, (1, hidden_dim), jnp.float32, -bound, bound)
    gamma = jnp.ones((1, hidden_dim), jnp.float32) + 0.1 * jax.random.normal(k_g, (1, hidden_dim))
    beta = 0.1 * jax.random.normal(k_be, (1, hidden_dim))

    # One-time parameter prep (init-time, not per forward call).
    w_bf, gamma_f, beta_f = prepool_prepare_params(w_t, gamma, beta)

    out = prepool_forward(h, w_bf, gamma_f, beta_f, n_features, hidden_dim)
    out = jax.block_until_ready(out)

    ref = prepool_reference(h, w_t, b, gamma, beta, n_features)
    np.testing.assert_allclose(np.asarray(out, dtype=np.float32), np.asarray(ref),
                               rtol=2e-2, atol=2e-2)

    print("KERNEL_OK")
</pallas_src>

<mosaic_0001>
module attributes {stable_mosaic.version = 11 : i64} {
  func.func @_stats_kernel(%arg0: i32, %arg1: memref<8x128xf32, #tpu.memory_space<vmem>>, %arg2: memref<128x128xbf16, #tpu.memory_space<vmem>>, %arg3: memref<1x128xf32, #tpu.memory_space<vmem>>, %arg4: memref<1x128xf32, #tpu.memory_space<vmem>>, %arg5: memref<1x128xf32, #tpu.memory_space<vmem>>, %arg6: memref<1x128xf32, #tpu.memory_space<vmem>>, %arg7: memref<1x128xf32, #tpu.memory_space<vmem>>, %arg8: memref<1x128xf32, #tpu.memory_space<vmem>>) attributes {dimension_semantics = [#tpu.dimension_semantics<arbitrary>], iteration_bounds = array<i64: 1>, scalar_prefetch = 0 : i64, scratch_operands = 2 : i64, tpu.core_type = #tpu.core_type<tc>, window_params = [{transform_indices = @transform_0, window_bounds = array<i64: 8, 128>}, {pipeline_mode = #tpu.pipeline_mode<synchronous>, transform_indices = @transform_1, window_bounds = array<i64: 128, 128>}, {pipeline_mode = #tpu.pipeline_mode<synchronous>, transform_indices = @transform_2, window_bounds = array<i64: 1, 128>}, {pipeline_mode = #tpu.pipeline_mode<synchronous>, transform_indices = @transform_3, window_bounds = array<i64: 1, 128>}, {pipeline_mode = #tpu.pipeline_mode<synchronous>, transform_indices = @transform_4, window_bounds = array<i64: 1, 128>}, {pipeline_mode = #tpu.pipeline_mode<synchronous>, transform_indices = @transform_5, window_bounds = array<i64: 1, 128>}]} {
    %c0_i32 = arith.constant 0 : i32
    %0 = arith.cmpi eq, %arg0, %c0_i32 : i32
    %1 = arith.extui %0 : i1 to i32
    %c0_i32_0 = arith.constant 0 : i32
    %2 = arith.cmpi ne, %1, %c0_i32_0 : i32
    scf.if %2 {
      %cst_16 = arith.constant 0.000000e+00 : f32
      %21 = vector.broadcast %cst_16 : f32 to vector<1x128xf32>
      %c0_17 = arith.constant 0 : index
      %c0_18 = arith.constant 0 : index
      %22 = vector.load %arg7[%c0_17, %c0_18] : memref<1x128xf32, #tpu.memory_space<vmem>>, vector<1x128xf32>
      tpu.vector_store %arg7[%c0_17, %c0_18], %21 {strides = array<i32>} : memref<1x128xf32, #tpu.memory_space<vmem>>, vector<1x128xf32>,
      %cst_19 = arith.constant 0.000000e+00 : f32
      %23 = vector.broadcast %cst_19 : f32 to vector<1x128xf32>
      %c0_20 = arith.constant 0 : index
      %c0_21 = arith.constant 0 : index
      %24 = vector.load %arg8[%c0_20, %c0_21] : memref<1x128xf32, #tpu.memory_space<vmem>>, vector<1x128xf32>
      tpu.vector_store %arg8[%c0_20, %c0_21], %23 {strides = array<i32>} : memref<1x128xf32, #tpu.memory_space<vmem>>, vector<1x128xf32>,
    } else {
    }
    %c0 = arith.constant 0 : index
    %c0_1 = arith.constant 0 : index
    %3 = vector.load %arg1[%c0, %c0_1] : memref<8x128xf32, #tpu.memory_space<vmem>>, vector<8x128xf32>
    %4 = arith.truncf %3 : vector<8x128xf32> to vector<8x128xbf16>
    %c0_2 = arith.constant 0 : index
    %c0_3 = arith.constant 0 : index
    %5 = vector.load %arg2[%c0_2, %c0_3] : memref<128x128xbf16, #tpu.memory_space<vmem>>, vector<128x128xbf16>
    %cst = arith.constant dense<0.000000e+00> : vector<8x128xf32>
    %6 = tpu.matmul %4, %5, %cst {dimension_numbers = #tpu.dot_dimension_numbers<[1], [0], [0], [1], [0, 0, 1, 1], [], []>} : vector<8x128xbf16>, vector<128x128xbf16>, vector<8x128xf32> -> vector<8x128xf32>
    %c0_4 = arith.constant 0 : index
    %c0_5 = arith.constant 0 : index
    %7 = vector.load %arg7[%c0_4, %c0_5] : memref<1x128xf32, #tpu.memory_space<vmem>>, vector<1x128xf32>
    %cst_6 = arith.constant dense<0.000000e+00> : vector<128xf32>
    %8 = vector.multi_reduction <add>, %6, %cst_6 [0] : vector<8x128xf32> to vector<128xf32>
    %9 = vector.shape_cast %8 : vector<128xf32> to vector<1x128xf32>
    %10 = arith.addf %7, %9 : vector<1x128xf32>
    %c0_7 = arith.constant 0 : index
    %c0_8 = arith.constant 0 : index
    %11 = vector.load %arg7[%c0_7, %c0_8] : memref<1x128xf32, #tpu.memory_space<vmem>>, vector<1x128xf32>
    tpu.vector_store %arg7[%c0_7, %c0_8], %10 {strides = array<i32>} : memref<1x128xf32, #tpu.memory_space<vmem>>, vector<1x128xf32>,
    %c0_9 = arith.constant 0 : index
    %c0_10 = arith.constant 0 : index
    %12 = vector.load %arg8[%c0_9, %c0_10] : memref<1x128xf32, #tpu.memory_space<vmem>>, vector<1x128xf32>
    %13 = arith.mulf %6, %6 : vector<8x128xf32>
    %cst_11 = arith.constant dense<0.000000e+00> : vector<128xf32>
    %14 = vector.multi_reduction <add>, %13, %cst_11 [0] : vector<8x128xf32> to vector<128xf32>
    %15 = vector.shape_cast %14 : vector<128xf32> to vector<1x128xf32>
    %16 = arith.addf %12, %15 : vector<1x128xf32>
    %c0_12 = arith.constant 0 : index
    %c0_13 = arith.constant 0 : index
    %17 = vector.load %arg8[%c0_12, %c0_13] : memref<1x128xf32, #tpu.memory_space<vmem>>, vector<1x128xf32>
    tpu.vector_store %arg8[%c0_12, %c0_13], %16 {strides = array<i32>} : memref<1x128xf32, #tpu.memory_space<vmem>>, vector<1x128xf32>,
    %c0_i32_14 = arith.constant 0 : i32
    %18 = arith.cmpi eq, %arg0, %c0_i32_14 : i32
    %19 = arith.extui %18 : i1 to i32
    %c0_i32_15 = arith.constant 0 : i32
    %20 = arith.cmpi ne, %19, %c0_i32_15 : i32
    scf.if %20 {
      %c0_16 = arith.constant 0 : index
      %c0_17 = arith.constant 0 : index
      %21 = vector.load %arg7[%c0_16, %c0_17] : memref<1x128xf32, #tpu.memory_space<vmem>>, vector<1x128xf32>
      %cst_18 = arith.constant 1.250000e-01 : f32
      %22 = vector.broadcast %cst_18 : f32 to vector<1x128xf32>
      %23 = arith.mulf %21, %22 : vector<1x128xf32>
      %c0_19 = arith.constant 0 : index
      %c0_20 = arith.constant 0 : index
      %24 = vector.load %arg8[%c0_19, %c0_20] : memref<1x128xf32, #tpu.memory_space<vmem>>, vector<1x128xf32>
      %cst_21 = arith.constant 1.250000e-01 : f32
      %25 = vector.broadcast %cst_21 : f32 to vector<1x128xf32>
      %26 = arith.mulf %24, %25 : vector<1x128xf32>
      %27 = arith.mulf %23, %23 : vector<1x128xf32>
      %28 = arith.subf %26, %27 : vector<1x128xf32>
      %cst_22 = arith.constant 0.000000e+00 : f32
      %29 = vector.broadcast %cst_22 : f32 to vector<1x128xf32>
      %30 = arith.maximumf %28, %29 : vector<1x128xf32>
      %c0_23 = arith.constant 0 : index
      %c0_24 = arith.constant 0 : index
      %31 = vector.load %arg3[%c0_23, %c0_24] : memref<1x128xf32, #tpu.memory_space<vmem>>, vector<1x128xf32>
      %cst_25 = arith.constant 9.99999974E-6 : f32
      %32 = vector.broadcast %cst_25 : f32 to vector<1x128xf32>
      %33 = arith.addf %30, %32 : vector<1x128xf32>
      %34 = math.rsqrt %33 : vector<1x128xf32>
      %35 = arith.mulf %31, %34 : vector<1x128xf32>
      %c0_26 = arith.constant 0 : index
      %c0_27 = arith.constant 0 : index
      %36 = vector.load %arg5[%c0_26, %c0_27] : memref<1x128xf32, #tpu.memory_space<vmem>>, vector<1x128xf32>
      tpu.vector_store %arg5[%c0_26, %c0_27], %35 {strides = array<i32>} : memref<1x128xf32, #tpu.memory_space<vmem>>, vector<1x128xf32>,
      %c0_28 = arith.constant 0 : index
      %c0_29 = arith.constant 0 : index
      %37 = vector.load %arg4[%c0_28, %c0_29] : memref<1x128xf32, #tpu.memory_space<vmem>>, vector<1x128xf32>
      %38 = arith.mulf %23, %35 : vector<1x128xf32>
      %39 = arith.subf %37, %38 : vector<1x128xf32>
      %c0_30 = arith.constant 0 : index
      %c0_31 = arith.constant 0 : index
      %40 = vector.load %arg6[%c0_30, %c0_31] : memref<1x128xf32, #tpu.memory_space<vmem>>, vector<1x128xf32>
      tpu.vector_store %arg6[%c0_30, %c0_31], %39 {strides = array<i32>} : memref<1x128xf32, #tpu.memory_space<vmem>>, vector<1x128xf32>,
    } else {
    }
    return
  }
  func.func @transform_0(%arg0: i32) -> (i32, i32) {
    %c0_i32 = arith.constant 0 : i32
    %c0_i32_0 = arith.constant 0 : i32
    return %arg0, %c0_i32 : i32, i32
  }
  func.func @transform_1(%arg0: i32) -> (i32, i32) {
    %c0_i32 = arith.constant 0 : i32
    %c0_i32_0 = arith.constant 0 : i32
    %c0_i32_1 = arith.constant 0 : i32
    return %c0_i32, %c0_i32_0 : i32, i32
  }
  func.func @transform_2(%arg0: i32) -> (i32, i32) {
    %c0_i32 = arith.constant 0 : i32
    %c0_i32_0 = arith.constant 0 : i32
    %c0_i32_1 = arith.constant 0 : i32
    return %c0_i32, %c0_i32_0 : i32, i32
  }
  func.func @transform_3(%arg0: i32) -> (i32, i32) {
    %c0_i32 = arith.constant 0 : i32
    %c0_i32_0 = arith.constant 0 : i32
    %c0_i32_1 = arith.constant 0 : i32
    return %c0_i32, %c0_i32_0 : i32, i32
  }
  func.func @transform_4(%arg0: i32) -> (i32, i32) {
    %c0_i32 = arith.constant 0 : i32
    %c0_i32_0 = arith.constant 0 : i32
    %c0_i32_1 = arith.constant 0 : i32
    return %c0_i32, %c0_i32_0 : i32, i32
  }
  func.func @transform_5(%arg0: i32) -> (i32, i32) {
    %c0_i32 = arith.constant 0 : i32
    %c0_i32_0 = arith.constant 0 : i32
    %c0_i32_1 = arith.constant 0 : i32
    return %c0_i32, %c0_i32_0 : i32, i32
  }
}

</mosaic_0001>

<bundles_post_ra>
// kernel: tpu_custom_call.1
= control target key start
LH: loop header
LB: loop body
LE: loop exit
PB: predicated region body
PF: predicated region fallthrough
CT: control target
= control target key end

     0   :  { %11 = vsyncpa [#allocation5], 0  ;;  %s478_s0 = inlined_call_operand.hbm [shape: f32[8,128], index: 0, kind: input, shape index: {}]   ;;  %s479_s1 = inlined_call_operand.hbm [shape: bf16[128,128], index: 1, kind: input, shape index: {}]   ;;  %s480_s2 = inlined_call_operand.vmem [shape: f32[1,128], index: 2, kind: input, shape index: {}]   ;;  %s481_s3 = inlined_call_operand.vmem [shape: f32[1,128], index: 3, kind: input, shape index: {}]   ;;  %s482_s4 = inlined_call_operand.hbm [shape: f32[1,128], index: 4, kind: output, shape index: {0}]   ;;  %s483_s5 = inlined_call_operand.hbm [shape: f32[1,128], index: 5, kind: output, shape index: {1}]  }
   0x1   :  { %12 = vsyncpa [#allocation8], 0 }
   0x2   :  { %13 = vsyncpa [#allocation6], 0 }
   0x3   :  { %14 = vsyncpa [#allocation11], 0  ;;  %s379_s18 = smov [#allocation4]   ;;  %s380_s20 = smov [#allocation7]  }
   0x4   :  { %s21_s19 = sshll.u32 %s379_s18, 4  ;;  %s30_s21 = sshll.u32 %s380_s20, 4  ;;  %s22_s19 = int_to_ptr.vmem [resolvable:$true] %s21_s19  ;;  %s417_s21 = int_to_ptr.vmem [resolvable:$true] %s30_s21 }
   0x5   :  { %s283_s24 = scalar_lea.hbm %s478_s0, 128 }
   0x6   :  { %p284_p0 = scmp.ne.s32.totalorder %s478_s0, %s283_s24  ;;  %p287_p1 = scmp.lt.u32.totalorder %s283_s24, %s478_s0 }
   0x8   :  { %p289_p2 = pnand %p287_p1, %p284_p0 }
   0xa   :  { %292 = shalt.err (!%p289_p2)
}
   0xb   :  { %s293_s29 = scalar_lea.vmem %s22_s19, 128  ;;  %p298_p4 = scmp.lt.s32.totalorder %s22_s19, %s22_s19 }
   0xc   :  { %p294_p3 = scmp.ne.s32.totalorder %s22_s19, %s293_s29  ;;  %p299_p5 = scmp.lt.s32.totalorder %s293_s29, %s293_s29 }
   0xe   :  { %p300_p6 = por %p299_p5, %p298_p4 }
  0x10   :  { %p301_p7 = pnand %p300_p6, %p294_p3 }
  0x12   :  { %304 = shalt.err (!%p301_p7)
}
  0x13   :  { %24 = dma.hbm_to_vmem [thread:$0]  %s478_s0, 128, %s22_s19, [#allocation5]  }
  0x14   :  { %s305_s9 = scalar_lea.hbm %s479_s1, 1024 }
  0x15   :  { %p306_p8 = scmp.ne.s32.totalorder %s479_s1, %s305_s9  ;;  %p309_p9 = scmp.lt.u32.totalorder %s305_s9, %s479_s1 }
  0x17   :  { %p311_p10 = pnand %p309_p9, %p306_p8 }
  0x19   :  { %314 = shalt.err (!%p311_p10)
}
  0x1a   :  { %s315_s14 = scalar_lea.vmem %s417_s21, 1024  ;;  %p320_p12 = scmp.lt.s32.totalorder %s417_s21, %s417_s21 }
  0x1b   :  { %p316_p11 = scmp.ne.s32.totalorder %s417_s21, %s315_s14  ;;  %p321_p13 = scmp.lt.s32.totalorder %s315_s14, %s315_s14 }
  0x1d   :  { %p322_p0 = por %p321_p13, %p320_p12 }
  0x1f   :  { %p323_p1 = pnand %p322_p0, %p316_p11 }
  0x21   :  { %326 = shalt.err (!%p323_p1)
}
  0x22   :  { %s381_s0 = smov 64   ;;  %s382_s15 = smov 4  }
  0x23   :  { %36 = dma.hbm_to_vmem [thread:$0]  %s479_s1, 1024, %s417_s21, [#allocation8], %s381_s0, %s381_s0, %s382_s15  }
  0x24   :  { %371 = dma.done.wait [#allocation5], 128  }
  0x25   :  { %372 = vsyncadd [#allocation5], 4294967168 }
  0x26   :  { %373 = dma.done.wait [#allocation8], 1024  }
  0x27   :  { %374 = vsyncadd [#allocation8], 4294966272  ;;  %v383_v0 = vmov 0.0   ;;  %vm384_vm0 = vmmov 0   ;;  %v273_v1 = vld [vmem:[#allocation7] sm:$0xff]   ;;  %v274_v2 = vld [vmem:[#allocation7 + $0x8] sm:$0xff]  }
  0x28   :  { %245 = vmatprep.subr.bf16.mxu0 %v383_v0  ;;  %52 = vst [vmem:[#allocation2] sm:$0x1] %v383_v0  ;;  %53 = vst [vmem:[#allocation3] sm:$0x1] %v383_v0  ;;  %261 = vmatprep.mubr.msk.bf16.mxu0 %vm384_vm0, %v383_v0  ;;  %v275_v3 = vld [vmem:[#allocation7 + $0x10] sm:$0xff]   ;;  %v276_v4 = vld [vmem:[#allocation7 + $0x18] sm:$0xff]  }
  0x29   :  { %246 = vmatpush3.bf16.msra.mxu0 %v273_v1  ;;  %v277_v5 = vld [vmem:[#allocation7 + $0x20] sm:$0xff]   ;;  %v278_v6 = vld [vmem:[#allocation7 + $0x28] sm:$0xff]   ;;  %v279_v7 = vld [vmem:[#allocation7 + $0x30] sm:$0xff]   ;;  %s385_s19 = smov [#allocation9]   ;;  %s386_s23 = smov [#allocation10]  }
  0x2a   :  { %247 = vmatprep.subr.bf16.mxu0 %v383_v0  ;;  %v280_v8 = vld [vmem:[#allocation7 + $0x38] sm:$0xff]   ;;  %v189_v40 = vld [vmem:[%s480_s2] sm:$0x1]  ;;  %s204_s20 = sshll.u32 %s385_s19, 4  ;;  %s214_s24 = sshll.u32 %s386_s23, 4  ;;  %s205_s20 = int_to_ptr.vmem [resolvable:$true] %s204_s20  ;;  %s215_s24 = int_to_ptr.vmem [resolvable:$true] %s214_s24 }
  0x2b   :  { %v54_v9 = vld [vmem:[#allocation4] sm:$0xff]  ;;  %v194_v43 = vld [vmem:[%s481_s3] sm:$0x1]  ;;  %s327_s25 = scalar_lea.vmem %s205_s20, 16  ;;  %s331_s26 = scalar_lea.vmem %s205_s20, 32 }
  0x2c   :  { %v55_v10 = vpack.c.bf16 %v54_v9, %v54_v9  ;;  %p328_p2 = scmp.ne.s32.totalorder %s205_s20, %s327_s25  ;;  %p332_p3 = scmp.lt.s32.totalorder %s205_s20, %s205_s20 }
  0x2d   :  { %248 = vmatpush3.bf16.msra.mxu0 %v274_v2  ;;  %p333_p4 = scmp.lt.s32.totalorder %s331_s26, %s327_s25 }
  0x2e   :  { %249 = vmatprep.subr.bf16.mxu0 %v383_v0 }
  0x2f   :  { %v160_v25 = vld [vmem:[#allocation2] sm:$0x1]  ;;  %v169_v28 = vld [vmem:[#allocation3] sm:$0x1]  ;;  %p334_p5 = por %p333_p4, %p332_p3 }
  0x31   :  { %250 = vmatpush3.bf16.msra.mxu0 %v275_v3  ;;  %p335_p6 = pnand %p334_p5, %p328_p2 }
  0x32   :  { %251 = vmatprep.subr.bf16.mxu0 %v383_v0 }
  0x35   :  { %252 = vmatpush3.bf16.msra.mxu0 %v276_v4 }
  0x36   :  { %253 = vmatprep.subr.bf16.mxu0 %v383_v0 }
  0x39   :  { %254 = vmatpush3.bf16.msra.mxu0 %v277_v5 }
  0x3a   :  { %255 = vmatprep.subr.bf16.mxu0 %v383_v0 }
  0x3d   :  { %256 = vmatpush3.bf16.msra.mxu0 %v278_v6 }
  0x3e   :  { %257 = vmatprep.subr.bf16.mxu0 %v383_v0 }
  0x41   :  { %258 = vmatpush3.bf16.msra.mxu0 %v279_v7 }
  0x42   :  { %259 = vmatprep.subr.bf16.mxu0 %v383_v0 }
  0x45   :  { %260 = vmatpush3.bf16.msra.mxu0 %v280_v8 }
  0x48   :  { %262 = vmatmul.mubr.bf16.vlgmr.msra.gmra.mrb[0].mxu0 %v55_v10 }
 0x11b   :  { %v154_v11 = vpop.f32.mrb[0].mxu0 }
 0x11c   :  { %v161_v12 = vrot.slane %v154_v11, 4  ;;  %v170_v13 = vmul.f32 %v154_v11, %v154_v11  ;;  %v263_v14 = vpop.f32.mrb[1].mxu0 }
 0x11d   :  { %v157_v15 = vpop.f32.mrb[2].mxu0 }
 0x11e   :  { %v162_v16 = vadd.f32 %v161_v12, %v154_v11  ;;  %v171_v17 = vrot.slane %v170_v13, 4  ;;  %v264_v18 = vpop.f32.mrb[3].mxu0 }
 0x120   :  { %v163_v19 = vrot.slane %v162_v16, 2  ;;  %v172_v20 = vadd.f32 %v171_v17, %v170_v13 }
 0x122   :  { %v164_v21 = vadd.f32 %v163_v19, %v162_v16  ;;  %v173_v22 = vrot.slane %v172_v20, 2 }
 0x124   :  { %v165_v23 = vrot.slane %v164_v21, 1  ;;  %v174_v24 = vadd.f32 %v173_v22, %v172_v20 }
 0x126   :  { %v166_v26 = vadd.f32 %v165_v23, %v164_v21  ;;  %v175_v27 = vrot.slane %v174_v24, 1 }
 0x128   :  { %v167_v29 = vadd.f32 %v166_v26, %v160_v25  ;;  %v176_v30 = vadd.f32 %v175_v27, %v174_v24 }
 0x12a   :  { %168 = vst [vmem:[#allocation2] sm:$0x1] %v167_v29  ;;  %v177_v31 = vadd.f32 %v176_v30, %v169_v28 }
 0x12c   :  { %178 = vst [vmem:[#allocation3] sm:$0x1] %v177_v31 }
 0x131   :  { %v182_v32 = vld [vmem:[#allocation2] sm:$0x1] }
 0x132   :  { %v183_v33 = vmul.f32 0.125, %v182_v32 }
 0x133   :  { %v184_v34 = vld [vmem:[#allocation3] sm:$0x1] }
 0x134   :  { %v185_v35 = vmul.f32 0.125, %v184_v34  ;;  %v186_v36 = vmul.f32 %v183_v33, %v183_v33 }
 0x136   :  { %v187_v37 = vsub.f32 %v185_v35, %v186_v36 }
 0x138   :  { %v188_v38 = vmax.f32 %v187_v37, 0.0 }
 0x13a   :  { %v190_v39 = vadd.f32 1e-05, %v188_v38 }
 0x13c   :  { %281 = vrsqrt.f32 %v190_v39 }
 0x146   :  { %v282_v41 = vpop.eup %281 }
 0x147   :  { %v192_v42 = vmul.f32 %v282_v41, %v189_v40 }
 0x149   :  { %193 = vst [vmem:[#allocation9] sm:$0x1] %v192_v42  ;;  %v195_v44 = vmul.f32 %v192_v42, %v183_v33 }
 0x14a   :  { %338 = shalt.err (!%p335_p6)
}
 0x14b   :  { %s339_s28 = scalar_lea.hbm %s482_s4, 16 }
 0x14c   :  { %p340_p7 = scmp.ne.s32.totalorder %s482_s4, %s339_s28  ;;  %p343_p8 = scmp.lt.u32.totalorder %s339_s28, %s482_s4 }
 0x14e   :  { %p345_p9 = pnand %p343_p8, %p340_p7 }
 0x150   :  { %348 = shalt.err (!%p345_p9)
}
 0x151   :  { %207 = dma.vmem_to_hbm [thread:$0]  %s205_s20, 16, %s482_s4, [#allocation6]   ;;  %v196_v45 = vsub.f32 %v194_v43, %v195_v44 }
 0x152   :  { %s349_s9 = scalar_lea.vmem %s215_s24, 16  ;;  %s353_s10 = scalar_lea.vmem %s215_s24, 32 }
 0x153   :  { %197 = vst [vmem:[#allocation10] sm:$0x1] %v196_v45  ;;  %p350_p10 = scmp.ne.s32.totalorder %s215_s24, %s349_s9  ;;  %p354_p11 = scmp.lt.s32.totalorder %s215_s24, %s215_s24 }
 0x154   :  { %p355_p12 = scmp.lt.s32.totalorder %s353_s10, %s349_s9 }
 0x156   :  { %p356_p13 = por %p355_p12, %p354_p11 }
 0x158   :  { %p357_p0 = pnand %p356_p13, %p350_p10 }
 0x15a   :  { %360 = shalt.err (!%p357_p0)
}
 0x15b   :  { %s361_s13 = scalar_lea.hbm %s483_s5, 16 }
 0x15c   :  { %p362_p1 = scmp.ne.s32.totalorder %s483_s5, %s361_s13  ;;  %p365_p2 = scmp.lt.u32.totalorder %s361_s13, %s483_s5 }
 0x15e   :  { %p367_p3 = pnand %p365_p2, %p362_p1 }
 0x160   :  { %370 = shalt.err (!%p367_p3)
}
 0x161   :  { %217 = dma.vmem_to_hbm [thread:$0]  %s215_s24, 16, %s483_s5, [#allocation11]  }
 0x162   :  { %375 = dma.done.wait [#allocation6], 16  }
 0x163   :  { %376 = vsyncadd [#allocation6], 4294967280 }
 0x164   :  { %377 = dma.done.wait [#allocation11], 16  }
 0x165   :  { %378 = vsyncadd [#allocation11], 4294967280 }
 0x166   :  { %224 = vsyncpa [#allocation5], 1 }
 0x167   :  { %225 = vsyncpa [#allocation8], 1 }
 0x168   :  { %226 = vsyncpa [#allocation6], 1 }
 0x169   :  { %227 = vsyncpa [#allocation11], 1 }

</bundles_post_ra>
